<compile_context>
chip_gen: v6e
topology: v6e:2x2x1
jax: 0.10.0
libtpu: 0.0.40
codegen_flags: <defaults>
</compile_context>

<pallas_src>
import numpy as np
import jax
import jax.numpy as jnp
from jax.experimental import pallas as pl
from jax.experimental.pallas import tpu as pltpu

ATTACKER_CURRENT = 0.5
ATTACKER_VISITED = 0.1
EXIT = 1.0

LANES = 128     # f32 vreg lane width
SUBLANES = 8    # f32 vreg sublane count
T_DIM = 8       # width of the time branch (fc_t_1 / fc_t_2 output)
BT = 8          # batch rows per grid step (one f32 sublane group)


def _round_up(n, m):
    return (n + m - 1) // m * m


# --------------------------------------------------------------------------------------
# One-time parameter prep: transpose PyTorch (out, in) weights to (in, out), zero-pad rows
# only to a multiple of 8 and columns to 128, and pack everything into a single
# (rows, 128) f32 buffer (~86 KB). fc_t_2's columns and bias are pre-shifted to lanes
# [hidden, hidden+8) so the t-branch lands directly in its concat([h, t]) position.
# --------------------------------------------------------------------------------------
def prepare_params(params):
    hidden = params["seq_fc2_w"].shape[0]
    relevant_v = params["st_fc1_w"].shape[0]
    max_actions = params["fc_w"].shape[0]
    in_dim = params["seq_fc1_w"].shape[1]            # num_nodes + 1
    assert hidden + T_DIM <= LANES and relevant_v <= LANES and max_actions <= LANES

    xw = _round_up(in_dim, SUBLANES)                  # fc1 K
    kh = _round_up(hidden, SUBLANES)                  # fc2 K
    kst = _round_up(hidden + T_DIM, SUBLANES)         # st_fc1 K
    kv = _round_up(relevant_v, SUBLANES)              # final fc K

    def pad2(a, rows, col_off=0):
        a = np.asarray(a, dtype=np.float32)
        out = np.zeros((rows, LANES), dtype=np.float32)
        out[: a.shape[0], col_off:col_off + a.shape[1]] = a
        return out

    w1 = pad2(np.asarray(params["seq_fc1_w"]).T, xw)                    # (16, 128)
    w2 = pad2(np.asarray(params["seq_fc2_w"]).T, kh)                    # (32, 128)
    wt2 = pad2(np.asarray(params["fc_t_2_w"]).T, T_DIM, col_off=hidden)  # (8, 128) shifted
    wst = pad2(np.asarray(params["st_fc1_w"]).T, kst)                   # (40, 128) un-split
    wf = pad2(np.asarray(params["fc_w"]).T, kv)                         # (64, 128)

    # One (8,128) tile holding every bias row plus fc_t_1's (8,1) weight as a row.
    bias = np.zeros((SUBLANES, LANES), dtype=np.float32)
    bias[0, :hidden] = np.asarray(params["seq_fc1_b"])
    bias[1, :hidden] = np.asarray(params["seq_fc2_b"])
    bias[2, :T_DIM] = np.asarray(params["fc_t_1_b"])
    bias[3, hidden:hidden + T_DIM] = np.asarray(params["fc_t_2_b"])     # shifted with wt2
    bias[4, :relevant_v] = np.asarray(params["st_fc1_b"])
    bias[5, :max_actions] = np.asarray(params["fc_b"])
    bias[6, :T_DIM] = np.asarray(params["fc_t_1_w"]).reshape(-1)

    blocks = [("w1", w1), ("w2", w2), ("wt2", wt2), ("wst", wst), ("wf", wf), ("bias", bias)]
    offsets, row = {}, 0
    for name, blk in blocks:
        offsets[name] = row
        row += blk.shape[0]
    # TODO(synk): optionally store `packed` as bf16 (halves the param DMA on v6e/v7x);
    # kept f32 so VPU-side math needs no casts and v5e (no bf16 VALU) is unaffected.
    packed = jnp.asarray(np.concatenate([b for _, b in blocks], axis=0))  # (rows, 128)

    meta = dict(offsets=offsets, rows=row, xw=xw, kh=kh, kst=kst, kv=kv,
                hidden=hidden, relevant_v=relevant_v, max_actions=max_actions,
                in_dim=in_dim)
    return packed, meta


# --------------------------------------------------------------------------------------
# Kernel: one 8-row batch tile per grid step. Static ref slices (offsets are multiples of
# 8) recover the individual tensors from the packed buffer. The n_feature scatter is done
# in-kernel with iota compares so no dense feature tensor ever crosses the host boundary.
# --------------------------------------------------------------------------------------
def _make_kernel(meta, hist_len, n_exits, time_horizon):
    offs = meta["offsets"]
    xw, kh, kst, kv = meta["xw"], meta["kh"], meta["kst"], meta["kv"]
    o_w1, o_w2, o_wt2 = offs["w1"], offs["w2"], offs["wt2"]
    o_wst, o_wf, o_b = offs["wst"], offs["wf"], offs["bias"]
    inv_T = float(1.0 / time_horizon)
    f32 = jnp.float32

    def kernel(exits_ref, hist_ref, lens_ref, p_ref, o_ref):
        relu = lambda a: jnp.maximum(a, 0.0)

        bias = p_ref[o_b:o_b + SUBLANES, :]                    # single (8,128) load
        b1, b2, bt1, bt2 = bias[0:1], bias[1:2], bias[2:3], bias[3:4]
        bs, bf, wt1 = bias[4:5], bias[5:6], bias[6:7]

        hist = hist_ref[...]                                   # (BT, hist_len) int32
        lens = lens_ref[...]                                   # (BT, 1) int32

        # ---- on-device n_feature scatter: exits -> 1.0, visited -> 0.1, current -> 0.5 ----
        col = jax.lax.broadcasted_iota(jnp.int32, (BT, xw), 1)
        nf = jnp.zeros((BT, xw), dtype=f32)
        for e in range(n_exits):                               # exits (SMEM scalar reads)
            nf = jnp.where(col == exits_ref[e], EXIT, nf)
        for j in range(hist_len):                              # history[:-1] -> VISITED
            visited = (col == hist[:, j:j + 1]) & (lens > j + 1)
            nf = jnp.where(visited, ATTACKER_VISITED, nf)
        cur = hist[:, 0:1]                                     # history[-1] -> CURRENT
        for j in range(1, hist_len):
            cur = jnp.where(lens == j + 1, hist[:, j:j + 1], cur)
        nf = jnp.where(col == cur, ATTACKER_CURRENT, nf)

        # ---- SeqEncoder h path (MXU, K-sliced to the packed row counts) ----
        h = relu(jnp.dot(nf, p_ref[o_w1:o_w1 + xw, :],
                         preferred_element_type=f32) + b1)     # (BT, 128), lanes>=hidden == 0
        h = relu(jnp.dot(h[:, :kh], p_ref[o_w2:o_w2 + kh, :],
                         preferred_element_type=f32) + b2)

        # ---- time branch: norm_t computed in-kernel; fc_t_2 lands on lanes [hidden, hidden+8) ----
        norm_t = (lens.astype(f32) - 1.0) * inv_T              # (BT, 1)
        t1 = relu(norm_t * wt1 + bt1)                          # lanes [0, 8) live
        t2 = relu(jnp.dot(t1[:, :T_DIM], p_ref[o_wt2:o_wt2 + T_DIM, :],
                          preferred_element_type=f32) + bt2)   # lanes [hidden, hidden+8) live

        # ---- StateEncoder.fc1(concat([h, t])): lane-disjoint add + one un-split MXU dot ----
        feat = h + t2
        v = relu(jnp.dot(feat[:, :kst], p_ref[o_wst:o_wst + kst, :],
                         preferred_element_type=f32) + bs)

        # ---- final fc (MXU); lane-dense (BT, 128) unmasked store ----
        o_ref[...] = jnp.dot(v[:, :kv], p_ref[o_wf:o_wf + kv, :],
                             preferred_element_type=f32) + bf

    return kernel


def make_forward(meta, batch_pad, hist_len, n_exits, time_horizon):
    rows = meta["rows"]
    grid_spec = pltpu.PrefetchScalarGridSpec(
        num_scalar_prefetch=1,                                  # exits -> SMEM
        grid=(batch_pad // BT,),
        in_specs=[
            pl.BlockSpec((BT, hist_len), lambda i, ex: (i, 0)),     # padded histories
            pl.BlockSpec((BT, 1), lambda i, ex: (i, 0)),            # history lengths
            pl.BlockSpec((rows, LANES), lambda i, ex: (0, 0)),      # packed params (resident)
        ],
        out_specs=pl.BlockSpec((BT, LANES), lambda i, ex: (i, 0)),
    )
    call = pl.pallas_call(
        _make_kernel(meta, hist_len, n_exits, time_horizon),
        out_shape=jax.ShapeDtypeStruct((batch_pad, LANES), jnp.float32),
        grid_spec=grid_spec,
        compiler_params=pltpu.CompilerParams(dimension_semantics=("parallel",)),
    )
    max_actions = meta["max_actions"]

    @jax.jit
    def forward(exits_arr, hist, lens, packed):
        out = call(exits_arr, hist, lens, packed)
        return out[:, :max_actions]

    return forward


# --------------------------------------------------------------------------------------
# Host glue: only pads the ragged Python history lists into small int32 arrays.
# --------------------------------------------------------------------------------------
def build_inputs(histories, exits, batch_pad, hist_len):
    hist = np.full((batch_pad, hist_len), -1, dtype=np.int32)
    lens = np.zeros((batch_pad, 1), dtype=np.int32)
    for i, h in enumerate(histories):
        hist[i, :len(h)] = h
        lens[i, 0] = len(h)
    ex = np.asarray(exits, dtype=np.int32)
    return jnp.asarray(ex), jnp.asarray(hist), jnp.asarray(lens)


def init_params(key, num_nodes, hidden_size, relevant_v_size, max_actions):
    # AA_MA.init_weights(): every parameter ~ Normal(0, 0.1).
    def nrm(k, shape):
        return 0.1 * jax.random.normal(k, shape, dtype=jnp.float32)
    ks = jax.random.split(key, 12)
    return {
        "seq_fc1_w": nrm(ks[0], (hidden_size, num_nodes + 1)),
        "seq_fc1_b": nrm(ks[1], (hidden_size,)),
        "seq_fc2_w": nrm(ks[2], (hidden_size, hidden_size)),
        "seq_fc2_b": nrm(ks[3], (hidden_size,)),
        "fc_t_1_w":  nrm(ks[4], (8, 1)),
        "fc_t_1_b":  nrm(ks[5], (8,)),
        "fc_t_2_w":  nrm(ks[6], (8, 8)),
        "fc_t_2_b":  nrm(ks[7], (8,)),
        "st_fc1_w":  nrm(ks[8], (relevant_v_size, hidden_size + 8)),
        "st_fc1_b":  nrm(ks[9], (relevant_v_size,)),
        "fc_w":      nrm(ks[10], (max_actions, relevant_v_size)),
        "fc_b":      nrm(ks[11], (max_actions,)),
        # TODO(synk): embedding_p / fc_p_* params exist in the module but are unused
        # on the num_defender=None, seq_mode='mlp' forward path; not materialized here.
    }


def reference_forward(params, n_feature, norm_t):
    """Pure-JAX reference of the same forward for correctness checking."""
    relu = lambda a: jnp.maximum(a, 0.0)
    h = relu(n_feature @ params["seq_fc1_w"].T + params["seq_fc1_b"])
    h = relu(h @ params["seq_fc2_w"].T + params["seq_fc2_b"])
    t = relu(norm_t @ params["fc_t_1_w"].T + params["fc_t_1_b"])
    t = relu(t @ params["fc_t_2_w"].T + params["fc_t_2_b"])
    feat = jnp.concatenate([h, t], axis=1)
    v = relu(feat @ params["st_fc1_w"].T + params["st_fc1_b"])
    out = v @ params["fc_w"].T + params["fc_b"]
    return out[0] if out.shape[0] == 1 else out


if __name__ == "__main__":
    # Small config: num_nodes=15 (-> 16 feature cols), hidden=32, relevant_v=64, actions=8.
    num_nodes = 15
    time_horizon = 8
    hidden_size = 32
    relevant_v_size = 64
    max_actions = 8

    key = jax.random.PRNGKey(0)
    params = init_params(key, num_nodes, hidden_size, relevant_v_size, max_actions)

    # One-time layout prep + kernel build (cached across calls in a real loop).
    packed, meta = prepare_params(params)

    histories = [[1, 3, 5], [2, 4]]
    exits = [14, 15]
    B = len(histories)
    Bp = _round_up(B, BT)                       # pad batch to a full sublane group
    hist_len = max(len(h) for h in histories)

    forward = make_forward(meta, Bp, hist_len, len(exits), time_horizon)
    ex, hist, lens = build_inputs(histories, exits, Bp, hist_len)

    out = forward(ex, hist, lens, packed)[:B]
    out = jax.block_until_ready(out)
    if out.shape[0] == 1:                       # torch output.squeeze(0)
        out = out[0]

    # Host-built reference features (exactly the PyTorch scatter) for correctness check.
    in_dim = num_nodes + 1
    nf = np.zeros((B, in_dim), dtype=np.float32)
    nt = np.zeros((B, 1), dtype=np.float32)
    for i, h in enumerate(histories):
        nf[i, exits] = EXIT
        nf[i, h[:-1]] = ATTACKER_VISITED
        nf[i, h[-1]] = ATTACKER_CURRENT
        nt[i, 0] = (len(h) - 1) / time_horizon
    ref = reference_forward(params, jnp.asarray(nf), jnp.asarray(nt))
    np.testing.assert_allclose(np.asarray(out), np.asarray(ref), rtol=1e-5, atol=1e-5)

    print("KERNEL_OK")
</pallas_src>

<mosaic_0001>
module attributes {stable_mosaic.version = 11 : i64} {
  func.func @kernel(%arg0: i32, %arg1: memref<2xi32, #tpu.memory_space<smem>>, %arg2: memref<8x3xi32, #tpu.memory_space<vmem>>, %arg3: memref<8x1xi32, #tpu.memory_space<vmem>>, %arg4: memref<168x128xf32, #tpu.memory_space<vmem>>, %arg5: memref<8x128xf32, #tpu.memory_space<vmem>>) attributes {dimension_semantics = [#tpu.dimension_semantics<parallel>], iteration_bounds = array<i64: 1>, scalar_prefetch = 1 : i64, scratch_operands = 0 : i64, tpu.core_type = #tpu.core_type<tc>, window_params = [{transform_indices = @transform_0, window_bounds = array<i64: 8, 3>}, {transform_indices = @transform_1, window_bounds = array<i64: 8, 1>}, {pipeline_mode = #tpu.pipeline_mode<synchronous>, transform_indices = @transform_2, window_bounds = array<i64: 168, 128>}, {transform_indices = @transform_3, window_bounds = array<i64: 8, 128>}]} {
    %c160 = arith.constant 160 : index
    %c0 = arith.constant 0 : index
    %0 = vector.load %arg4[%c160, %c0] : memref<168x128xf32, #tpu.memory_space<vmem>>, vector<8x128xf32>
    %1 = vector.extract_strided_slice %0 {offsets = [0, 0], sizes = [1, 128], strides = [1, 1]} : vector<8x128xf32> to vector<1x128xf32>
    %2 = vector.extract_strided_slice %0 {offsets = [1, 0], sizes = [1, 128], strides = [1, 1]} : vector<8x128xf32> to vector<1x128xf32>
    %3 = vector.extract_strided_slice %0 {offsets = [2, 0], sizes = [1, 128], strides = [1, 1]} : vector<8x128xf32> to vector<1x128xf32>
    %4 = vector.extract_strided_slice %0 {offsets = [3, 0], sizes = [1, 128], strides = [1, 1]} : vector<8x128xf32> to vector<1x128xf32>
    %5 = vector.extract_strided_slice %0 {offsets = [4, 0], sizes = [1, 128], strides = [1, 1]} : vector<8x128xf32> to vector<1x128xf32>
    %6 = vector.extract_strided_slice %0 {offsets = [5, 0], sizes = [1, 128], strides = [1, 1]} : vector<8x128xf32> to vector<1x128xf32>
    %7 = vector.extract_strided_slice %0 {offsets = [6, 0], sizes = [1, 128], strides = [1, 1]} : vector<8x128xf32> to vector<1x128xf32>
    %c0_0 = arith.constant 0 : index
    %c0_1 = arith.constant 0 : index
    %8 = vector.load %arg2[%c0_0, %c0_1] : memref<8x3xi32, #tpu.memory_space<vmem>>, vector<8x3xi32>
    %c0_2 = arith.constant 0 : index
    %c0_3 = arith.constant 0 : index
    %9 = vector.load %arg3[%c0_2, %c0_3] : memref<8x1xi32, #tpu.memory_space<vmem>>, vector<8x1xi32>
    %10 = tpu.iota {dimensions = array<i32: 1>} : vector<8x16xi32>
    %cst = arith.constant 0.000000e+00 : f32
    %11 = vector.broadcast %cst : f32 to vector<8x16xf32>
    %c0_4 = arith.constant 0 : index
    %12 = memref.load %arg1[%c0_4] : memref<2xi32, #tpu.memory_space<smem>>
    %13 = vector.broadcast %12 : i32 to vector<8x16xi32>
    %14 = arith.cmpi eq, %10, %13 : vector<8x16xi32>
    %cst_5 = arith.constant 1.000000e+00 : f32
    %15 = vector.broadcast %cst_5 : f32 to vector<8x16xf32>
    %16 = arith.select %14, %15, %11 : vector<8x16xi1>, vector<8x16xf32>
    %c1 = arith.constant 1 : index
    %17 = memref.load %arg1[%c1] : memref<2xi32, #tpu.memory_space<smem>>
    %18 = vector.broadcast %17 : i32 to vector<8x16xi32>
    %19 = arith.cmpi eq, %10, %18 : vector<8x16xi32>
    %cst_6 = arith.constant 1.000000e+00 : f32
    %20 = vector.broadcast %cst_6 : f32 to vector<8x16xf32>
    %21 = arith.select %19, %20, %16 : vector<8x16xi1>, vector<8x16xf32>
    %22 = vector.extract_strided_slice %8 {offsets = [0, 0], sizes = [8, 1], strides = [1, 1]} : vector<8x3xi32> to vector<8x1xi32>
    %23 = vector.broadcast %22 : vector<8x1xi32> to vector<8x16xi32>
    %24 = arith.cmpi eq, %10, %23 : vector<8x16xi32>
    %c1_i32 = arith.constant 1 : i32
    %25 = vector.broadcast %c1_i32 : i32 to vector<8x1xi32>
    %26 = arith.cmpi sgt, %9, %25 : vector<8x1xi32>
    %27 = vector.broadcast %26 : vector<8x1xi1> to vector<8x16xi1>
    %28 = arith.andi %24, %27 : vector<8x16xi1>
    %cst_7 = arith.constant 1.000000e-01 : f32
    %29 = vector.broadcast %cst_7 : f32 to vector<8x16xf32>
    %30 = arith.select %28, %29, %21 : vector<8x16xi1>, vector<8x16xf32>
    %31 = vector.extract_strided_slice %8 {offsets = [0, 1], sizes = [8, 1], strides = [1, 1]} : vector<8x3xi32> to vector<8x1xi32>
    %32 = vector.broadcast %31 : vector<8x1xi32> to vector<8x16xi32>
    %33 = arith.cmpi eq, %10, %32 : vector<8x16xi32>
    %c2_i32 = arith.constant 2 : i32
    %34 = vector.broadcast %c2_i32 : i32 to vector<8x1xi32>
    %35 = arith.cmpi sgt, %9, %34 : vector<8x1xi32>
    %36 = vector.broadcast %35 : vector<8x1xi1> to vector<8x16xi1>
    %37 = arith.andi %33, %36 : vector<8x16xi1>
    %cst_8 = arith.constant 1.000000e-01 : f32
    %38 = vector.broadcast %cst_8 : f32 to vector<8x16xf32>
    %39 = arith.select %37, %38, %30 : vector<8x16xi1>, vector<8x16xf32>
    %40 = vector.extract_strided_slice %8 {offsets = [0, 2], sizes = [8, 1], strides = [1, 1]} : vector<8x3xi32> to vector<8x1xi32>
    %41 = vector.broadcast %40 : vector<8x1xi32> to vector<8x16xi32>
    %42 = arith.cmpi eq, %10, %41 : vector<8x16xi32>
    %c3_i32 = arith.constant 3 : i32
    %43 = vector.broadcast %c3_i32 : i32 to vector<8x1xi32>
    %44 = arith.cmpi sgt, %9, %43 : vector<8x1xi32>
    %45 = vector.broadcast %44 : vector<8x1xi1> to vector<8x16xi1>
    %46 = arith.andi %42, %45 : vector<8x16xi1>
    %cst_9 = arith.constant 1.000000e-01 : f32
    %47 = vector.broadcast %cst_9 : f32 to vector<8x16xf32>
    %48 = arith.select %46, %47, %39 : vector<8x16xi1>, vector<8x16xf32>
    %49 = vector.extract_strided_slice %8 {offsets = [0, 0], sizes = [8, 1], strides = [1, 1]} : vector<8x3xi32> to vector<8x1xi32>
    %c2_i32_10 = arith.constant 2 : i32
    %50 = vector.broadcast %c2_i32_10 : i32 to vector<8x1xi32>
    %51 = arith.cmpi eq, %9, %50 : vector<8x1xi32>
    %52 = vector.extract_strided_slice %8 {offsets = [0, 1], sizes = [8, 1], strides = [1, 1]} : vector<8x3xi32> to vector<8x1xi32>
    %53 = arith.select %51, %52, %49 : vector<8x1xi1>, vector<8x1xi32>
    %c3_i32_11 = arith.constant 3 : i32
    %54 = vector.broadcast %c3_i32_11 : i32 to vector<8x1xi32>
    %55 = arith.cmpi eq, %9, %54 : vector<8x1xi32>
    %56 = vector.extract_strided_slice %8 {offsets = [0, 2], sizes = [8, 1], strides = [1, 1]} : vector<8x3xi32> to vector<8x1xi32>
    %57 = arith.select %55, %56, %53 : vector<8x1xi1>, vector<8x1xi32>
    %58 = vector.broadcast %57 : vector<8x1xi32> to vector<8x16xi32>
    %59 = arith.cmpi eq, %10, %58 : vector<8x16xi32>
    %cst_12 = arith.constant 5.000000e-01 : f32
    %60 = vector.broadcast %cst_12 : f32 to vector<8x16xf32>
    %61 = arith.select %59, %60, %48 : vector<8x16xi1>, vector<8x16xf32>
    %c0_13 = arith.constant 0 : index
    %c0_14 = arith.constant 0 : index
    %62 = vector.load %arg4[%c0_13, %c0_14] : memref<168x128xf32, #tpu.memory_space<vmem>>, vector<16x128xf32>
    %cst_15 = arith.constant dense<0.000000e+00> : vector<8x128xf32>
    %63 = tpu.matmul %61, %62, %cst_15 {dimension_numbers = #tpu.dot_dimension_numbers<[1], [0], [0], [1], [0, 0, 1, 1], [], []>} : vector<8x16xf32>, vector<16x128xf32>, vector<8x128xf32> -> vector<8x128xf32>
    %64 = vector.broadcast %1 : vector<1x128xf32> to vector<8x128xf32>
    %65 = arith.addf %63, %64 : vector<8x128xf32>
    %cst_16 = arith.constant 0.000000e+00 : f32
    %66 = vector.broadcast %cst_16 : f32 to vector<8x128xf32>
    %67 = arith.maximumf %65, %66 : vector<8x128xf32>
    %68 = vector.extract_strided_slice %67 {offsets = [0, 0], sizes = [8, 32], strides = [1, 1]} : vector<8x128xf32> to vector<8x32xf32>
    %c16 = arith.constant 16 : index
    %c0_17 = arith.constant 0 : index
    %69 = vector.load %arg4[%c16, %c0_17] : memref<168x128xf32, #tpu.memory_space<vmem>>, vector<32x128xf32>
    %cst_18 = arith.constant dense<0.000000e+00> : vector<8x128xf32>
    %70 = tpu.matmul %68, %69, %cst_18 {dimension_numbers = #tpu.dot_dimension_numbers<[1], [0], [0], [1], [0, 0, 1, 1], [], []>} : vector<8x32xf32>, vector<32x128xf32>, vector<8x128xf32> -> vector<8x128xf32>
    %71 = vector.broadcast %2 : vector<1x128xf32> to vector<8x128xf32>
    %72 = arith.addf %70, %71 : vector<8x128xf32>
    %cst_19 = arith.constant 0.000000e+00 : f32
    %73 = vector.broadcast %cst_19 : f32 to vector<8x128xf32>
    %74 = arith.maximumf %72, %73 : vector<8x128xf32>
    %75 = arith.sitofp %9 : vector<8x1xi32> to vector<8x1xf32>
    %cst_20 = arith.constant 1.000000e+00 : f32
    %76 = vector.broadcast %cst_20 : f32 to vector<8x1xf32>
    %77 = arith.subf %75, %76 : vector<8x1xf32>
    %cst_21 = arith.constant 1.250000e-01 : f32
    %78 = vector.broadcast %cst_21 : f32 to vector<8x1xf32>
    %79 = arith.mulf %77, %78 : vector<8x1xf32>
    %80 = vector.broadcast %79 : vector<8x1xf32> to vector<8x128xf32>
    %81 = vector.broadcast %7 : vector<1x128xf32> to vector<8x128xf32>
    %82 = arith.mulf %80, %81 : vector<8x128xf32>
    %83 = vector.broadcast %3 : vector<1x128xf32> to vector<8x128xf32>
    %84 = arith.addf %82, %83 : vector<8x128xf32>
    %cst_22 = arith.constant 0.000000e+00 : f32
    %85 = vector.broadcast %cst_22 : f32 to vector<8x128xf32>
    %86 = arith.maximumf %84, %85 : vector<8x128xf32>
    %87 = vector.extract_strided_slice %86 {offsets = [0, 0], sizes = [8, 8], strides = [1, 1]} : vector<8x128xf32> to vector<8x8xf32>
    %c48 = arith.constant 48 : index
    %c0_23 = arith.constant 0 : index
    %88 = vector.load %arg4[%c48, %c0_23] : memref<168x128xf32, #tpu.memory_space<vmem>>, vector<8x128xf32>
    %cst_24 = arith.constant dense<0.000000e+00> : vector<8x128xf32>
    %89 = tpu.matmul %87, %88, %cst_24 {dimension_numbers = #tpu.dot_dimension_numbers<[1], [0], [0], [1], [0, 0, 1, 1], [], []>} : vector<8x8xf32>, vector<8x128xf32>, vector<8x128xf32> -> vector<8x128xf32>
    %90 = vector.broadcast %4 : vector<1x128xf32> to vector<8x128xf32>
    %91 = arith.addf %89, %90 : vector<8x128xf32>
    %cst_25 = arith.constant 0.000000e+00 : f32
    %92 = vector.broadcast %cst_25 : f32 to vector<8x128xf32>
    %93 = arith.maximumf %91, %92 : vector<8x128xf32>
    %94 = arith.addf %74, %93 : vector<8x128xf32>
    %95 = vector.extract_strided_slice %94 {offsets = [0, 0], sizes = [8, 40], strides = [1, 1]} : vector<8x128xf32> to vector<8x40xf32>
    %c56 = arith.constant 56 : index
    %c0_26 = arith.constant 0 : index
    %96 = vector.load %arg4[%c56, %c0_26] : memref<168x128xf32, #tpu.memory_space<vmem>>, vector<40x128xf32>
    %cst_27 = arith.constant dense<0.000000e+00> : vector<8x128xf32>
    %97 = tpu.matmul %95, %96, %cst_27 {dimension_numbers = #tpu.dot_dimension_numbers<[1], [0], [0], [1], [0, 0, 1, 1], [], []>} : vector<8x40xf32>, vector<40x128xf32>, vector<8x128xf32> -> vector<8x128xf32>
    %98 = vector.broadcast %5 : vector<1x128xf32> to vector<8x128xf32>
    %99 = arith.addf %97, %98 : vector<8x128xf32>
    %cst_28 = arith.constant 0.000000e+00 : f32
    %100 = vector.broadcast %cst_28 : f32 to vector<8x128xf32>
    %101 = arith.maximumf %99, %100 : vector<8x128xf32>
    %102 = vector.extract_strided_slice %101 {offsets = [0, 0], sizes = [8, 64], strides = [1, 1]} : vector<8x128xf32> to vector<8x64xf32>
    %c96 = arith.constant 96 : index
    %c0_29 = arith.constant 0 : index
    %103 = vector.load %arg4[%c96, %c0_29] : memref<168x128xf32, #tpu.memory_space<vmem>>, vector<64x128xf32>
    %cst_30 = arith.constant dense<0.000000e+00> : vector<8x128xf32>
    %104 = tpu.matmul %102, %103, %cst_30 {dimension_numbers = #tpu.dot_dimension_numbers<[1], [0], [0], [1], [0, 0, 1, 1], [], []>} : vector<8x64xf32>, vector<64x128xf32>, vector<8x128xf32> -> vector<8x128xf32>
    %105 = vector.broadcast %6 : vector<1x128xf32> to vector<8x128xf32>
    %106 = arith.addf %104, %105 : vector<8x128xf32>
    %c0_31 = arith.constant 0 : index
    %c0_32 = arith.constant 0 : index
    %107 = vector.load %arg5[%c0_31, %c0_32] : memref<8x128xf32, #tpu.memory_space<vmem>>, vector<8x128xf32>
    tpu.vector_store %arg5[%c0_31, %c0_32], %106 {strides = array<i32>} : memref<8x128xf32, #tpu.memory_space<vmem>>, vector<8x128xf32>,
    return
  }
  func.func @transform_0(%arg0: i32, %arg1: memref<2xi32, #tpu.memory_space<smem>>) -> (i32, i32) {
    %c0_i32 = arith.constant 0 : i32
    %c0_i32_0 = arith.constant 0 : i32
    return %arg0, %c0_i32 : i32, i32
  }
  func.func @transform_1(%arg0: i32, %arg1: memref<2xi32, #tpu.memory_space<smem>>) -> (i32, i32) {
    %c0_i32 = arith.constant 0 : i32
    %c0_i32_0 = arith.constant 0 : i32
    return %arg0, %c0_i32 : i32, i32
  }
  func.func @transform_2(%arg0: i32, %arg1: memref<2xi32, #tpu.memory_space<smem>>) -> (i32, i32) {
    %c0_i32 = arith.constant 0 : i32
    %c0_i32_0 = arith.constant 0 : i32
    %c0_i32_1 = arith.constant 0 : i32
    return %c0_i32, %c0_i32_0 : i32, i32
  }
  func.func @transform_3(%arg0: i32, %arg1: memref<2xi32, #tpu.memory_space<smem>>) -> (i32, i32) {
    %c0_i32 = arith.constant 0 : i32
    %c0_i32_0 = arith.constant 0 : i32
    return %arg0, %c0_i32 : i32, i32
  }
}

</mosaic_0001>

<bundles_post_ra>
// kernel: forward.1
= control target key start
LH: loop header
LB: loop body
LE: loop exit
PB: predicated region body
PF: predicated region fallthrough
CT: control target
= control target key end

     0   :  { %s811_s0 = inlined_call_operand.vmem [shape: s32[2], index: 0, kind: input, shape index: {}]   ;;  %s812_s1 = inlined_call_operand.vmem [shape: s32[8,3], index: 1, kind: input, shape index: {}]   ;;  %s813_s2 = inlined_call_operand.vmem [shape: s32[8,1], index: 2, kind: input, shape index: {}]   ;;  %s814_s3 = inlined_call_operand.hbm [shape: f32[168,128], index: 3, kind: input, shape index: {}]   ;;  %s815_s4 = inlined_call_operand.hbm [shape: f32[8,128], index: 4, kind: output, shape index: {}]  }
   0x1   :  { %s9_s17 = sshll.u32 %s811_s0, 4  ;;  %s10_s17 = int_to_ptr.vmem [resolvable:$true] %s9_s17 }
   0x2   :  { %s652_s18 = scalar_lea.vmem %s10_s17, 16  ;;  %p657_p1 = scmp.lt.s32.totalorder %s10_s17, %s10_s17 }
   0x3   :  { %p653_p0 = scmp.ne.s32.totalorder %s10_s17, %s652_s18  ;;  %p658_p2 = scmp.lt.s32.totalorder %s652_s18, %s652_s18 }
   0x5   :  { %p659_p3 = por %p658_p2, %p657_p1 }
   0x7   :  { %p660_p4 = pnand %p659_p3, %p653_p0 }
   0x9   :  { %663 = shalt.err (!%p660_p4)  }
   0xa   :  { %s710_s19 = smov [#allocation3]  }
   0xb   :  { %12 = dma.vmem_to_smem %s10_s17, 16, %s710_s19, [#allocation2] }
   0xc   :  { %704 = dma.done.wait [#allocation2], 16 }
   0xd   :  { %705 = vsyncadd [#allocation2], 4294967280 }
   0xe   :  { %14 = sfence }
   0xf   :  { %15 = vsyncpa [#allocation5], 0 }
  0x10   :  { %16 = vsyncpa [#allocation6], 0  ;;  %s711_s20 = smov [#allocation4]  }
  0x11   :  { %s26_s21 = sshll.u32 %s711_s20, 4  ;;  %s27_s21 = int_to_ptr.vmem [resolvable:$true] %s26_s21 }
  0x12   :  { %s672_s22 = scalar_lea.vmem %s27_s21, 2688  ;;  %p677_p6 = scmp.lt.s32.totalorder %s27_s21, %s27_s21 }
  0x13   :  { %p673_p5 = scmp.ne.s32.totalorder %s27_s21, %s672_s22  ;;  %p678_p7 = scmp.lt.s32.totalorder %s672_s22, %s672_s22 }
  0x15   :  { %p679_p8 = por %p678_p7, %p677_p6 }
  0x17   :  { %p680_p9 = pnand %p679_p8, %p673_p5 }
  0x19   :  { %683 = shalt.err (!%p680_p9)
}
  0x1a   :  { %s712_s0 = smov 128   ;;  %s713_s23 = smov 8  }
  0x1b   :  { %32 = dma.hbm_to_vmem [thread:$0]  %s814_s3, 2688, %s27_s21, [#allocation5], %s712_s0, %s712_s0, %s713_s23  }
  0x1c   :  { %706 = dma.done.wait [#allocation5], 2688  }
  0x1d   :  { %707 = vsyncadd [#allocation5], 4294964608  ;;  %v714_v0 = vmov 0   ;;  %v715_v1 = vmov 1   ;;  %v716_v2 = vmov 0.0   ;;  %v37_v3 = vld [vmem:[%s812_s1] sm:$0xff]  ;;  %v39_v20 = vlaneseq }
  0x1e   :  { %647 = vset.pattern.permute.xlu1 %v714_v0  ;;  %648 = vset.pattern.permute.xlu0 %v715_v1  ;;  %v38_v4 = vld [vmem:[%s813_s2] sm:$0xff]  ;;  %s717_s3 = smov 127   ;;  %s718_s30 = smov 126   ;;  %v99_v8 = vld [vmem:[#allocation4 + $0x8] sm:$0xff]  ;;  %v719_v9 = vmov 2   ;;  %vm720_vm5 = vmmov 0  }
  0x1f   :  { %580 = vmatprep.subr.mxu0 %v716_v2  ;;  %587 = vmatprep.subr.mxu1 %v716_v2  ;;  %vm53_vm0 = vcmp.gt.s32.totalorder %v38_v4, 1  ;;  %vm65_vm1 = vcmp.gt.s32.totalorder %v38_v4, 2  ;;  %vm77_vm2 = vcmp.gt.s32.totalorder %v38_v4, 3  ;;  %v262_v10 = vcvt.s32.f32 %v38_v4  ;;  %v98_v13 = vld [vmem:[#allocation4] sm:$0xff]  ;;  %v182_v18 = vld [vmem:[#allocation4 + $0x28] sm:$0xff]  ;;  %s41_s1 = sld [smem:[#allocation3]] }
  0x20   :  { %86 = vrot.lane.b32.xlu0 %v37_v3, %s717_s3  ;;  %50 = vperm.xlu1 %647, %v37_v3   ;;  %v54_v5 = vsel %vm53_vm0, 1, %v714_v0  ;;  %v66_v6 = vsel %vm65_vm1, 1, %v714_v0  ;;  %v78_v7 = vsel %vm77_vm2, 1, %v714_v0  ;;  %vm85_vm3 = vcmp.eq.s32.totalorder %v38_v4, 2  ;;  %s548_s2 = sld [smem:[#allocation3 + $0x1]]  ;;  %v772_v35 = vld [vmem:[#allocation4 + $0xa0] sm:$0xff] }
  0x21   :  { %581 = vmatpush3.msra.mxu0 %v99_v8  ;;  %vm89_vm4 = vcmp.eq.s32.totalorder %v38_v4, 3  ;;  %v551_v12 = vadd.f32 -1.0, %v262_v10  ;;  %584 = vmatprep.mubr.msk.f32.mxu0 %vm720_vm5, %v716_v2  ;;  %v40_v22 = vand.u32 127, %v39_v20  ;;  %v769_v31 = vshrl.u32 %v39_v20, 7  ;;  %v281_v40 = vld [vmem:[#allocation4 + $0x30] sm:$0xff]  ;;  %v181_v47 = vld [vmem:[#allocation4 + $0x20] sm:$0xff] }
  0x22   :  { %582 = vmatprep.subr.mxu0 %v716_v2  ;;  %595 = vmatprep.mubr.msk.f32.mxu1 %vm720_vm5, %v716_v2  ;;  %vm104_vm1 = vcmask 130048   ;;  %v180_v48 = vld [vmem:[#allocation4 + $0x18] sm:$0xff]  ;;  %v179_v49 = vld [vmem:[#allocation4 + $0x10] sm:$0xff]  ;;  %v364_v60 = vld [vmem:[#allocation4 + $0x48] sm:$0xff]  ;;  %s721_s5 = smov [#allocation7]  }
  0x23   :  { %583 = vmatpush3.msra.mxu0 %v98_v13  ;;  %v264_v17 = vmul.f32 0.125, %v551_v12  ;;  %588 = vmatpush3.msra.mxu1 %v182_v18  ;;  %v272_v33 = vsub.s32 6, %v769_v31  ;;  %v277_v36 = vsub.s32 2, %v769_v31  ;;  %v366_v50 = vld [vmem:[#allocation4 + $0x58] sm:$0xff]  ;;  %v102_v51 = vsub.s32 0, %v769_v31  ;;  %v365_v59 = vld [vmem:[#allocation4 + $0x50] sm:$0xff] }
  0x24   :  { %90 = vrot.lane.b32.xlu0 %v37_v3, %s718_s30  ;;  %56 = vperm.xlu1 %647, %v54_v5   ;;  %v363_v61 = vld [vmem:[#allocation4 + $0x40] sm:$0xff]  ;;  %v362_v62 = vld [vmem:[#allocation4 + $0x38] sm:$0xff]  ;;  %v451_v1 = vld [vmem:[#allocation4 + $0x88] sm:$0xff]  ;;  %v284_v5 = vsub.s32 3, %v769_v31  ;;  %s539_s6 = sshll.u32 %s721_s5, 4  ;;  %s540_s6 = int_to_ptr.vmem [resolvable:$true] %s539_s6 }
  0x25   :  { %598 = vmatprep.subr.mxu0 %v716_v2  ;;  %589 = vmatprep.subr.mxu1 %v716_v2  ;;  %v42_v23 = vstv %s41_s1  ;;  %v273_v39 = vrot.slane %v772_v35, %v272_v33  ;;  %v278_v42 = vrot.slane %v772_v35, %v277_v36  ;;  %v103_v52 = vrot.slane %v772_v35, %v102_v51  ;;  %v453_v63 = vld [vmem:[#allocation4 + $0x98] sm:$0xff]  ;;  %v446_v18 = vld [vmem:[#allocation4 + $0x60] sm:$0xff]  ;;  %s684_s7 = scalar_lea.vmem %s540_s6, 128  ;;  %p689_p11 = scmp.lt.s32.totalorder %s540_s6, %s540_s6 }
  0x26   :  { %vm43_vm6 = vcmp.eq.s32.totalorder %v40_v22, %v42_v23  ;;  %v46_v24 = vstv %s548_s2  ;;  %590 = vmatpush3.msra.mxu1 %v181_v47  ;;  %v449_v4 = vld [vmem:[#allocation4 + $0x78] sm:$0xff]  ;;  %p685_p10 = scmp.ne.s32.totalorder %s540_s6, %s684_s7  ;;  %p690_p12 = scmp.lt.s32.totalorder %s684_s7, %s684_s7 }
  0x27   :  { %v44_v27 = vsel %vm43_vm6, 1.0, %v716_v2  ;;  %vm47_vm8 = vcmp.eq.s32.totalorder %v40_v22, %v46_v24  ;;  %591 = vmatprep.subr.mxu1 %v716_v2  ;;  %vm458_vm6 = vcmask 523264  }
  0x28   :  { %68 = vperm.xlu1 %647, %v66_v6   ;;  %62 = vperm.xlu0 %648, %v37_v3   ;;  %v48_v28 = vsel %vm47_vm8, 1.0, %v44_v27  ;;  %v185_v6 = vsub.s32 1, %v769_v31  ;;  %p691_p13 = por %p690_p12, %p689_p11 }
  0x29   :  { %592 = vmatpush3.msra.mxu1 %v180_v48 }
  0x2a   :  { %593 = vmatprep.subr.mxu1 %v716_v2  ;;  %v186_v8 = vrot.slane %v772_v35, %v185_v6  ;;  %p692_p0 = pnand %p691_p13, %p685_p10 }
  0x2b   :  { %594 = vmatpush3.msra.mxu1 %v179_v49 }
  0x2c   :  { %649 = vset.pattern.permute.xlu1 %v719_v9  ;;  %650 = vset.pattern.permute.xlu0 %v714_v0 }
  0x2d   :  { %74 = vperm.xlu1 %649, %v37_v3   ;;  %80 = vperm.xlu0 %650, %v78_v7   ;;  %v285_v7 = vrot.slane %v772_v35, %v284_v5 }
  0x2e   :  { %616 = vmatprep.subr.mxu1 %v716_v2 }
  0x31   :  { %651 = vset.pattern.permute.xlu1 %v714_v0  ;;  %v452_v0 = vld [vmem:[#allocation4 + $0x90] sm:$0xff] }
  0x92   :  { %v87_v11 = vpop.permute.xlu0 %86 }
  0x93   :  { %v88_v14 = vsel %vm85_vm3, %v87_v11, %v37_v3  ;;  %vm286_vm3 = vcmask 64512   ;;  %v450_v3 = vld [vmem:[#allocation4 + $0x80] sm:$0xff] }
  0x96   :  { %v91_v15 = vpop.permute.xlu0 %90 }
  0x97   :  { %v92_v16 = vsel %vm89_vm4, %v91_v15, %v88_v14  ;;  %vm187_vm4 = vcmask 261120  }
  0x98   :  { %94 = vperm.xlu1 %651, %v92_v16   ;;  %v448_v16 = vld [vmem:[#allocation4 + $0x70] sm:$0xff] }
  0x9b   :  { %v51_v19 = vpop.permute.xlu1 %50 }
  0x9c   :  { %267 = vperm.xlu1 %651, %v264_v17   ;;  %vm52_vm7 = vcmp.eq.s32.totalorder %v40_v22, %v51_v19  ;;  %v447_v17 = vld [vmem:[#allocation4 + $0x68] sm:$0xff]  ;;  %v369_v19 = vsub.s32 4, %v769_v31 }
  0x9e   :  { %v370_v20 = vrot.slane %v772_v35, %v369_v19 }
  0x9f   :  { %v57_v21 = vpop.permute.xlu1 %56 }
  0xa0   :  { %vm58_vm9 = vcmp.eq.s32.totalorder %v57_v21, 1 }
  0xa1   :  { %vm59_vm10 = vmand %vm52_vm7, %vm58_vm9 }
  0xa2   :  { %v60_v32 = vsel %vm59_vm10, 0.1, %v48_v28 }
  0xa3   :  { %v69_v25 = vpop.permute.xlu1 %68  ;;  %v63_v26 = vpop.permute.xlu0 %62 }
  0xa4   :  { %vm70_vm11 = vcmp.eq.s32.totalorder %v69_v25, 1  ;;  %vm64_vm12 = vcmp.eq.s32.totalorder %v40_v22, %v63_v26  ;;  %v456_v25 = vsub.s32 5, %v769_v31 }
  0xa5   :  { %vm71_vm13 = vmand %vm64_vm12, %vm70_vm11 }
  0xa6   :  { %v72_v34 = vsel %vm71_vm13, 0.1, %v60_v32  ;;  %v457_v26 = vrot.slane %v772_v35, %v456_v25 }
  0xa8   :  { %v75_v29 = vpop.permute.xlu1 %74  ;;  %v81_v30 = vpop.permute.xlu0 %80 }
  0xa9   :  { %vm76_vm14 = vcmp.eq.s32.totalorder %v40_v22, %v75_v29  ;;  %vm82_vm15 = vcmp.eq.s32.totalorder %v81_v30, 1 }
  0xaa   :  { %vm83_vm0 = vmand %vm76_vm14, %vm82_vm15 }
  0xab   :  { %v84_v38 = vsel %vm83_vm0, 0.1, %v72_v34 }
 0x113   :  { %v95_v37 = vpop.permute.xlu1 %94 }
 0x114   :  { %vm96_vm2 = vcmp.eq.s32.totalorder %v40_v22, %v95_v37 }
 0x115   :  { %v97_v41 = vsel %vm96_vm2, 0.5, %v84_v38 }
 0x116   :  { %585 = vmatmul.mubr.msk.f32.vlgmr.msra.gmra.mxu0 %vm104_vm1, %v97_v41 }
 0x117   :  { %v268_v43 = vpop.permute.xlu1 %267  ;;  %599 = vmatpush3.msra.mxu0 %v281_v40  ;;  %600 = vmatprep.mubr.msk.f32.mxu0 %vm720_vm5, %v716_v2 }
 0x118   :  { %v274_v44 = vmul.f32 %v273_v39, %v268_v43  ;;  %603 = vmatprep.subr.mxu0 %v716_v2 }
 0x11a   :  { %v279_v45 = vadd.f32 %v278_v42, %v274_v44 }
 0x11c   :  { %v280_v46 = vmax.f32 %v279_v45, 0.0 }
 0x11e   :  { %601 = vmatmul.mubr.msk.f32.vlgmr.msra.gmra.mxu0 %vm286_vm3, %v280_v46 }
 0x11f   :  { %613 = vmatprep.mubr.msk.f32.mxu0 %vm720_vm5, %v716_v2  ;;  %604 = vmatpush3.msra.mxu0 %v366_v50 }
 0x120   :  { %605 = vmatprep.subr.mxu0 %v716_v2 }
 0x121   :  { %606 = vmatpush3.msra.mxu0 %v365_v59 }
 0x122   :  { %607 = vmatprep.subr.mxu0 %v716_v2 }
 0x123   :  { %608 = vmatpush3.msra.mxu0 %v364_v60 }
 0x124   :  { %609 = vmatprep.subr.mxu0 %v716_v2 }
 0x125   :  { %610 = vmatpush3.msra.mxu0 %v363_v61 }
 0x126   :  { %611 = vmatprep.subr.mxu0 %v716_v2 }
 0x127   :  { %612 = vmatpush3.msra.mxu0 %v362_v62 }
 0x1d6   :  { %v174_v53 = vpop.f32.mrf.mxu0 }
 0x1d7   :  { %v175_v54 = vadd.f32 %v174_v53, %v103_v52 }
 0x1d8   :  { %v586_v55 = vpop.f32.mrf.mxu0 }
 0x1d9   :  { %v178_v56 = vmax.f32 %v175_v54, 0.0 }
 0x1db   :  { %596 = vmatmul.mubr.msk.f32.vlgmr.msra.gmra.mxu1 %vm187_vm4, %v178_v56 }
 0x1dc   :  { %632 = vmatprep.mubr.msk.f32.mxu1 %vm720_vm5, %v716_v2  ;;  %617 = vmatpush3.msra.mxu1 %v453_v63  ;;  %vm371_vm5 = vcmask 326656  }
 0x1dd   :  { %618 = vmatprep.subr.mxu1 %v716_v2 }
 0x1de   :  { %v356_v57 = vpop.f32.mrf.mxu0  ;;  %619 = vmatpush3.msra.mxu1 %v452_v0 }
 0x1df   :  { %620 = vmatprep.subr.mxu1 %v716_v2  ;;  %v357_v9 = vadd.f32 %v356_v57, %v285_v7 }
 0x1e0   :  { %v602_v58 = vpop.f32.mrf.mxu0  ;;  %621 = vmatpush3.msra.mxu1 %v451_v1 }
 0x1e1   :  { %622 = vmatprep.subr.mxu1 %v716_v2  ;;  %v360_v13 = vmax.f32 %v357_v9, 0.0 }
 0x1e2   :  { %623 = vmatpush3.msra.mxu1 %v450_v3 }
 0x1e3   :  { %624 = vmatprep.subr.mxu1 %v716_v2 }
 0x1e4   :  { %625 = vmatpush3.msra.mxu1 %v449_v4 }
 0x1e5   :  { %626 = vmatprep.subr.mxu1 %v716_v2 }
 0x1e6   :  { %627 = vmatpush3.msra.mxu1 %v448_v16 }
 0x1e7   :  { %628 = vmatprep.subr.mxu1 %v716_v2 }
 0x1e8   :  { %629 = vmatpush3.msra.mxu1 %v447_v17 }
 0x1e9   :  { %630 = vmatprep.subr.mxu1 %v716_v2 }
 0x1ea   :  { %631 = vmatpush3.msra.mxu1 %v446_v18 }
 0x29b   :  { %v257_v10 = vpop.f32.mrf.mxu1 }
 0x29c   :  { %v258_v11 = vadd.f32 %v257_v10, %v186_v8 }
 0x29d   :  { %v597_v12 = vpop.f32.mrf.mxu1 }
 0x29e   :  { %v261_v14 = vmax.f32 %v258_v11, 0.0 }
 0x2a0   :  { %v361_v15 = vadd.f32 %v360_v13, %v261_v14 }
 0x2a2   :  { %614 = vmatmul.mubr.msk.f32.vlgmr.msra.gmra.mxu0 %vm371_vm5, %v361_v15 }
 0x362   :  { %v441_v21 = vpop.f32.mrf.mxu0 }
 0x363   :  { %v442_v22 = vadd.f32 %v441_v21, %v370_v20 }
 0x364   :  { %v615_v23 = vpop.f32.mrf.mxu0 }
 0x365   :  { %v445_v24 = vmax.f32 %v442_v22, 0.0 }
 0x367   :  { %633 = vmatmul.mubr.msk.f32.vlgmr.msra.gmra.mxu1 %vm458_vm6, %v445_v24 }
 0x427   :  { %v528_v27 = vpop.f32.mrf.mxu1 }
 0x428   :  { %v529_v2 = vadd.f32 %v528_v27, %v457_v26 }
 0x429   :  { %v634_v28 = vpop.f32.mrf.mxu1 }
 0x42a   :  { %532 = vst [vmem:[#allocation7] sm:$0xff] %v529_v2 }
 0x42b   :  { %695 = shalt.err (!%p692_p0)
}
 0x42c   :  { %542 = dma.vmem_to_hbm [thread:$0]  %s540_s6, 128, %s815_s4, [#allocation6]  }
 0x42d   :  { %708 = dma.done.wait [#allocation6], 128  }
 0x42e   :  { %709 = vsyncadd [#allocation6], 4294967168 }
 0x42f   :  { %546 = vsyncpa [#allocation5], 1 }
 0x430   :  { %547 = vsyncpa [#allocation6], 1 }

</bundles_post_ra>
